<compile_context>
chip_gen: v6e
topology: v6e:2x2x1
jax: 0.10.0
libtpu: 0.0.40
codegen_flags: <defaults>
</compile_context>

<pallas_src>
import numpy as np
import jax
import jax.numpy as jnp
from jax.experimental import pallas as pl
from jax.experimental.pallas import tpu as pltpu


def _attentional_classify_kernel(sim_ref, mask_ref, out_ref):
    # sim_ref  : [TB, S]      native dtype (VMEM)
    # mask_ref : [S,  C_pad]  bfloat16     (VMEM, resident across grid steps)
    # out_ref  : [TB, C_pad]  float32      (VMEM)
    sim = sim_ref[...].astype(jnp.float32)

    # Numerically stable softmax pieces, without the per-element divide:
    #   log(softmax @ mask) = log(e @ mask) - log(sum(e))
    row_max = jnp.max(sim, axis=1, keepdims=True)          # XLU reduce
    e = jnp.exp(sim - row_max)                              # EUP
    denom = jnp.sum(e, axis=1, keepdims=True)               # XLU reduce

    mask = mask_ref[...].astype(jnp.float32)                # 0/1 exact in bf16
    grouped = jnp.dot(e, mask, preferred_element_type=jnp.float32)  # MXU

    out_ref[...] = jnp.log(grouped) - jnp.log(denom)


def _choose_batch_tile(batch: int, seq: int, itemsize: int) -> int:
    """Largest batch tile whose double-buffered sim block stays well under the
    default scoped VMEM limit on every generation (v5e 16 MiB ... v7x 32 MiB)."""
    budget = 8 * 1024 * 1024                       # bytes for 2x the sim tile
    max_tb = max(8, budget // max(1, 2 * seq * itemsize))
    max_tb = (max_tb // 8) * 8                     # sublane-aligned
    if batch <= max_tb:
        return batch                               # block == full dim: always legal
    return max(8, min(512, max_tb))                # divisible by 8 for (8,128) rule


def _attentional_classify_xla(similarities, mask_bf16, num_classes):
    # Plain-XLA fallback for tiny problems (kernel launch overhead dominates).
    sim = similarities.astype(jnp.float32)
    row_max = jnp.max(sim, axis=1, keepdims=True)
    e = jnp.exp(sim - row_max)
    denom = jnp.sum(e, axis=1, keepdims=True)
    grouped = jnp.dot(e, mask_bf16.astype(jnp.float32),
                      preferred_element_type=jnp.float32)
    return (jnp.log(grouped) - jnp.log(denom))[:, :num_classes]


def attentional_classify(similarities: jax.Array,
                         d_train1: np.ndarray,
                         *,
                         use_pallas: bool | None = None) -> jax.Array:
    """
    similarities: [batch, seq] float array (JAX), any float dtype
    d_train1:     [seq] integer label vector (concrete numpy — the set of unique
                  labels determines the output width, so it must be static)
    returns:      [batch, num_unique_labels] float32
    """
    d_train1 = np.asarray(d_train1)
    unique_labels = np.unique(d_train1)            # sorted, like torch.unique
    num_classes = int(unique_labels.shape[0])
    batch, seq = similarities.shape

    # Pad classes up to a lane-dense multiple of 128; padded columns have an
    # all-zero mask -> grouped sum 0 -> log(0) = -inf, sliced off below.
    c_pad = max(128, -(-num_classes // 128) * 128)
    mask_np = np.zeros((seq, c_pad), dtype=np.float32)
    mask_np[:, :num_classes] = (d_train1[:, None] == unique_labels[None, :])
    mask = jnp.asarray(mask_np, dtype=jnp.bfloat16)          # 0/1 exact in bf16

    if use_pallas is None:
        # Overhead-dominated below this; let XLA handle it.
        use_pallas = batch * seq >= 4096
    if not use_pallas:
        return _attentional_classify_xla(similarities, mask, num_classes)

    itemsize = jnp.dtype(similarities.dtype).itemsize
    tb = _choose_batch_tile(batch, seq, itemsize)
    grid = (pl.cdiv(batch, tb),)

    out_padded = pl.pallas_call(
        _attentional_classify_kernel,
        out_shape=jax.ShapeDtypeStruct((batch, c_pad), jnp.float32),
        grid=grid,
        in_specs=[
            pl.BlockSpec((tb, seq), lambda i: (i, 0)),        # batch-tiled sim
            pl.BlockSpec((seq, c_pad), lambda i: (0, 0)),     # resident mask
        ],
        out_specs=pl.BlockSpec((tb, c_pad), lambda i: (i, 0)),
        compiler_params=pltpu.CompilerParams(
            dimension_semantics=("parallel",),                # 2 TCs on v7x
        ),
    )(similarities, mask)

    return out_padded[:, :num_classes]


if __name__ == "__main__":
    key = jax.random.PRNGKey(0)

    batch = 2
    seq = 8

    k_sim, _ = jax.random.split(key)
    similarities = jax.random.normal(k_sim, (batch, seq), dtype=jnp.float32)

    # Support-set labels (concrete, deterministic): 4 unique classes over 8 items.
    d_train1 = np.array([0, 1, 2, 0, 1, 2, 3, 3], dtype=np.int32)

    # Force the Pallas path so the kernel itself is exercised at demo sizes
    # (the auto-dispatch would route this tiny problem to plain XLA).
    preds = attentional_classify(similarities, d_train1, use_pallas=True)
    preds = jax.block_until_ready(preds)

    # Sanity check against a pure-JAX reference of the original module's math.
    unique_labels = np.unique(d_train1)
    sm = jax.nn.softmax(similarities.astype(jnp.float32), axis=1)
    ref = jnp.stack(
        [jnp.log(sm[:, d_train1 == lab].sum(axis=1)) for lab in unique_labels],
        axis=1,
    )
    np.testing.assert_allclose(np.asarray(preds), np.asarray(ref), rtol=1e-5, atol=1e-5)

    print("KERNEL_OK")
</pallas_src>

<mosaic_0001>
module attributes {stable_mosaic.version = 11 : i64} {
  func.func @_attentional_classify_kernel(%arg0: i32, %arg1: memref<2x8xf32, #tpu.memory_space<vmem>>, %arg2: memref<8x128xbf16, #tpu.memory_space<vmem>>, %arg3: memref<2x128xf32, #tpu.memory_space<vmem>>) attributes {dimension_semantics = [#tpu.dimension_semantics<parallel>], iteration_bounds = array<i64: 1>, scalar_prefetch = 0 : i64, scratch_operands = 0 : i64, tpu.core_type = #tpu.core_type<tc>, window_params = [{transform_indices = @transform_0, window_bounds = array<i64: 2, 8>}, {pipeline_mode = #tpu.pipeline_mode<synchronous>, transform_indices = @transform_1, window_bounds = array<i64: 8, 128>}, {transform_indices = @transform_2, window_bounds = array<i64: 2, 128>}]} {
    %c0 = arith.constant 0 : index
    %c0_0 = arith.constant 0 : index
    %0 = vector.load %arg1[%c0, %c0_0] : memref<2x8xf32, #tpu.memory_space<vmem>>, vector<2x8xf32>
    %cst = arith.constant dense<0xFF800000> : vector<2xf32>
    %1 = vector.multi_reduction <maximumf>, %0, %cst [1] : vector<2x8xf32> to vector<2xf32>
    %2 = vector.shape_cast %1 : vector<2xf32> to vector<2x1xf32>
    %3 = vector.broadcast %2 : vector<2x1xf32> to vector<2x8xf32>
    %4 = arith.subf %0, %3 : vector<2x8xf32>
    %5 = math.exp %4 : vector<2x8xf32>
    %cst_1 = arith.constant dense<0.000000e+00> : vector<2xf32>
    %6 = vector.multi_reduction <add>, %5, %cst_1 [1] : vector<2x8xf32> to vector<2xf32>
    %7 = vector.shape_cast %6 : vector<2xf32> to vector<2x1xf32>
    %c0_2 = arith.constant 0 : index
    %c0_3 = arith.constant 0 : index
    %8 = vector.load %arg2[%c0_2, %c0_3] : memref<8x128xbf16, #tpu.memory_space<vmem>>, vector<8x128xbf16>
    %9 = arith.extf %8 : vector<8x128xbf16> to vector<8x128xf32>
    %cst_4 = arith.constant dense<0.000000e+00> : vector<2x128xf32>
    %10 = tpu.matmul %5, %9, %cst_4 {dimension_numbers = #tpu.dot_dimension_numbers<[1], [0], [0], [1], [0, 0, 1, 1], [], []>} : vector<2x8xf32>, vector<8x128xf32>, vector<2x128xf32> -> vector<2x128xf32>
    %11 = math.log %10 : vector<2x128xf32>
    %12 = math.log %7 : vector<2x1xf32>
    %13 = vector.broadcast %12 : vector<2x1xf32> to vector<2x128xf32>
    %14 = arith.subf %11, %13 : vector<2x128xf32>
    %c0_5 = arith.constant 0 : index
    %c0_6 = arith.constant 0 : index
    %15 = vector.load %arg3[%c0_5, %c0_6] : memref<2x128xf32, #tpu.memory_space<vmem>>, vector<2x128xf32>
    tpu.vector_store %arg3[%c0_5, %c0_6], %14 {strides = array<i32>} : memref<2x128xf32, #tpu.memory_space<vmem>>, vector<2x128xf32>,
    return
  }
  func.func @transform_0(%arg0: i32) -> (i32, i32) {
    %c0_i32 = arith.constant 0 : i32
    %c0_i32_0 = arith.constant 0 : i32
    return %arg0, %c0_i32 : i32, i32
  }
  func.func @transform_1(%arg0: i32) -> (i32, i32) {
    %c0_i32 = arith.constant 0 : i32
    %c0_i32_0 = arith.constant 0 : i32
    %c0_i32_1 = arith.constant 0 : i32
    return %c0_i32, %c0_i32_0 : i32, i32
  }
  func.func @transform_2(%arg0: i32) -> (i32, i32) {
    %c0_i32 = arith.constant 0 : i32
    %c0_i32_0 = arith.constant 0 : i32
    return %arg0, %c0_i32 : i32, i32
  }
}

</mosaic_0001>

<bundles_post_ra>
// kernel: tpu_custom_call.1
= control target key start
LH: loop header
LB: loop body
LE: loop exit
PB: predicated region body
PF: predicated region fallthrough
CT: control target
= control target key end

     0   :  { %7 = vsyncpa [#allocation3], 0  ;;  %s261_s0 = inlined_call_operand.hbm [shape: f32[2,8], index: 0, kind: input, shape index: {}]   ;;  %s262_s1 = inlined_call_operand.hbm [shape: bf16[8,128], index: 1, kind: input, shape index: {}]   ;;  %s263_s2 = inlined_call_operand.hbm [shape: f32[2,128], index: 2, kind: output, shape index: {}]  }
   0x1   :  { %8 = vsyncpa [#allocation6], 0 }
   0x2   :  { %9 = vsyncpa [#allocation4], 0  ;;  %s230_s9 = smov [#allocation2]   ;;  %s231_s11 = smov [#allocation5]  }
   0x3   :  { %s16_s10 = sshll.u32 %s230_s9, 4  ;;  %s26_s12 = sshll.u32 %s231_s11, 4  ;;  %s17_s10 = int_to_ptr.vmem [resolvable:$true] %s16_s10  ;;  %s27_s12 = int_to_ptr.vmem [resolvable:$true] %s26_s12 }
   0x4   :  { %s172_s13 = scalar_lea.vmem %s17_s10, 32  ;;  %p177_p1 = scmp.lt.s32.totalorder %s17_s10, %s17_s10 }
   0x5   :  { %p173_p0 = scmp.ne.s32.totalorder %s17_s10, %s172_s13  ;;  %p178_p2 = scmp.lt.s32.totalorder %s172_s13, %s172_s13 }
   0x7   :  { %p179_p3 = por %p178_p2, %p177_p1 }
   0x9   :  { %p180_p4 = pnand %p179_p3, %p173_p0 }
   0xb   :  { %183 = shalt.err (!%p180_p4)
}
   0xc   :  { %19 = dma.hbm_to_vmem [thread:$0]  %s261_s0, 32, %s17_s10, [#allocation3]  }
   0xd   :  { %s192_s16 = scalar_lea.vmem %s27_s12, 64  ;;  %p197_p6 = scmp.lt.s32.totalorder %s27_s12, %s27_s12 }
   0xe   :  { %p193_p5 = scmp.ne.s32.totalorder %s27_s12, %s192_s16  ;;  %p198_p7 = scmp.lt.s32.totalorder %s192_s16, %s192_s16 }
  0x10   :  { %p199_p8 = por %p198_p7, %p197_p6 }
  0x12   :  { %p200_p9 = pnand %p199_p8, %p193_p5 }
  0x14   :  { %203 = shalt.err (!%p200_p9)
}
  0x15   :  { %29 = dma.hbm_to_vmem [thread:$0]  %s262_s1, 64, %s27_s12, [#allocation6]  }
  0x16   :  { %224 = dma.done.wait [#allocation3], 32  }
  0x17   :  { %225 = vsyncadd [#allocation3], 4294967264 }
  0x18   :  { %226 = dma.done.wait [#allocation6], 64  }
  0x19   :  { %227 = vsyncadd [#allocation6], 4294967232  ;;  %vm37_vm0 = vcmask 58368   ;;  %v36_v0 = vld [vmem:[#allocation2] sm:$0x3]  ;;  %v232_v3 = vmov 0.0  }
  0x1a   :  { %v38_v1 = vsel %vm37_vm0, %v36_v0, -inf  ;;  %v47_v2 = vld [vmem:[#allocation5] sm:$0xf]  ;;  %148 = vmatprep.subr.mxu0 %v232_v3  ;;  %vm233_vm1 = vmmov 0   ;;  %vm49_vm2 = vcmask 64512   ;;  %s234_s0 = smov [#allocation7]  }
  0x1b   :  { %39 = vmax.xlane.f32.xlu0 %v38_v1  ;;  %v48_v4 = vunpack.c.l.bf16 %v47_v2  ;;  %150 = vmatprep.mubr.msk.f32.mxu0 %vm233_vm1, %v232_v3  ;;  %s135_s1 = sshll.u32 %s234_s0, 4  ;;  %s136_s1 = int_to_ptr.vmem [resolvable:$true] %s135_s1 }
  0x1c   :  { %s204_s19 = scalar_lea.vmem %s136_s1, 32  ;;  %p209_p11 = scmp.lt.s32.totalorder %s136_s1, %s136_s1 }
  0x1d   :  { %149 = vmatpush3.msra.mxu0 %v48_v4  ;;  %p205_p10 = scmp.ne.s32.totalorder %s136_s1, %s204_s19  ;;  %p210_p12 = scmp.lt.s32.totalorder %s204_s19, %s204_s19 }
  0x1f   :  { %p211_p13 = por %p210_p12, %p209_p11 }
  0x21   :  { %p212_p0 = pnand %p211_p13, %p205_p10 }
  0xa4   :  { %v40_v5 = vpop.xlane.xlu0 %39 }
  0xa5   :  { %v41_v6 = vsub.f32 %v36_v0, %v40_v5 }
  0xa7   :  { %v42_v7 = vmul.f32 1.442695, %v41_v6 }
  0xa9   :  { %158 = vpow2.f32 %v42_v7 }
  0xb6   :  { %v159_v8 = vpop.eup %158 }
  0xb7   :  { %151 = vmatmul.mubr.msk.f32.vlgmr.msra.gmra.mxu0 %vm49_vm2, %v159_v8  ;;  %v44_v9 = vsel %vm37_vm0, %v159_v8, 0.0 }
  0xb8   :  { %45 = vadd.xlane.f32.xlu0 %v44_v9 }
 0x141   :  { %v46_v10 = vpop.xlane.xlu0 %45 }
 0x142   :  { %160 = vlog2.f32 %v46_v10 }
 0x14f   :  { %v161_v13 = vpop.eup %160 }
 0x150   :  { %v126_v15 = vmul.f32 0.6931472, %v161_v13 }
 0x177   :  { %v119_v11 = vpop.f32.mrf.mxu0 }
 0x178   :  { %162 = vlog2.f32 %v119_v11 }
 0x179   :  { %v152_v12 = vpop.f32.mrf.mxu0 }
 0x185   :  { %v163_v14 = vpop.eup %162 }
 0x186   :  { %v124_v16 = vmul.f32 0.6931472, %v163_v14 }
 0x188   :  { %v127_v17 = vsub.f32 %v124_v16, %v126_v15 }
 0x18a   :  { %128 = vst [vmem:[#allocation7] sm:$0x3] %v127_v17 }
 0x18b   :  { %215 = shalt.err (!%p212_p0)
}
 0x18c   :  { %138 = dma.vmem_to_hbm [thread:$0]  %s136_s1, 32, %s263_s2, [#allocation4]  }
 0x18d   :  { %228 = dma.done.wait [#allocation4], 32  }
 0x18e   :  { %229 = vsyncadd [#allocation4], 4294967264 }
 0x18f   :  { %142 = vsyncpa [#allocation3], 1 }
 0x190   :  { %143 = vsyncpa [#allocation6], 1 }
 0x191   :  { %144 = vsyncpa [#allocation4], 1 }

</bundles_post_ra>
